<compile_context>
chip_gen: v7x
topology: tpu7x:2x2x1
jax: 0.10.0
libtpu: 0.0.40
codegen_flags: <defaults>
</compile_context>

<pallas_src>
import jax
import jax.numpy as jnp
from jax.experimental import pallas as pl
from jax.experimental.pallas import tpu as pltpu

_OUT_PAD = 128  # lane-dense padded output width (real output width is 2)


# ----------------------------- Pallas kernel --------------------------------

def _make_fused_kernel(n_layers, B, T, H, D_in):
    """Build the fused forward kernel for a fixed (static) configuration.

    Ref order: x, (w_ih, w_hh, b) * n_layers, w_out_pad, b_out_pad,
               out, act_scratch.
    All tensors are time-major inside the kernel.
    """

    def kernel(*refs):
        x_ref = refs[0]
        w_out_ref = refs[1 + 3 * n_layers]        # (H, 128), zero-padded
        b_out_ref = refs[2 + 3 * n_layers]        # (1, 128), zero-padded
        out_ref = refs[3 + 3 * n_layers]          # (T*B, 128)
        act_ref = refs[4 + 3 * n_layers]          # VMEM scratch (T, B, H)

        x = x_ref[...]                            # (T, B, D_in), f32

        # Layer 0: its input is fully available, so hoist projection + bias
        # into a single (T*B, D_in) x (D_in, H) matmul, off the serial chain.
        w_ih0 = refs[1][...]                      # (D_in, H) == W_ih^T
        w_hh0 = refs[2][...]                      # (H, H)    == W_hh^T
        b0 = refs[3][...]                         # (1, H)    == b_ih + b_hh
        xw0 = (
            jnp.dot(x.reshape(T * B, D_in), w_ih0,
                    preferred_element_type=jnp.float32)
            + b0
        ).reshape(T, B, H)

        # Layers >= 1: load weights once; hoist the bias broadcast out of the
        # time loop (broadcast_in_dim is not CSE'd inside loops).
        upper = []
        for l in range(1, n_layers):
            w_ih = refs[1 + 3 * l][...]           # (H, H)
            w_hh = refs[2 + 3 * l][...]           # (H, H)
            b = jnp.broadcast_to(refs[3 + 3 * l][...], (B, H))
            upper.append((w_ih, w_hh, b))

        # Cross-layer wavefront: critical path ~ T + n_layers - 1 tiny matmuls.
        h = [jnp.zeros((B, H), jnp.float32) for _ in range(n_layers)]
        for t in range(T):                        # static, fully unrolled
            h[0] = jnp.tanh(
                xw0[t]
                + jnp.dot(h[0], w_hh0, preferred_element_type=jnp.float32)
            )
            cur = h[0]
            for li, (w_ih, w_hh, b) in enumerate(upper, start=1):
                h[li] = jnp.tanh(
                    jnp.dot(cur, w_ih, preferred_element_type=jnp.float32)
                    + b
                    + jnp.dot(h[li], w_hh, preferred_element_type=jnp.float32)
                )
                cur = h[li]
            act_ref[t] = cur                      # contiguous (B, H) store

        # Final regressor: one matmul over all T*B rows, one lane-dense
        # (T*B, 128) unmasked store.
        h_all = act_ref[...].reshape(T * B, H)
        out_ref[...] = (
            jnp.dot(h_all, w_out_ref[...], preferred_element_type=jnp.float32)
            + b_out_ref[...]
        )

    return kernel


# ------------------------------- wrapper -------------------------------------

def model_rnn_forward(x, params, mag_nums):
    """Forward of ModelRNN in eval mode.

    x: (B, T, mag_nums + wifi_nums), batch-first like the PyTorch module.
    Note: cat([x[:, :, :mag], dropout(x[:, :, mag:])], dim=2) == x in eval
    mode, so `mag_nums` does not affect the math (kept for signature parity).
    """
    # TODO(synk): training-mode input / inter-layer dropout not implemented
    # (eval semantics only).
    del mag_nums
    B, T, D_in = x.shape
    n_layers = len(params["rnn"])
    H = params["rnn"][0][1].shape[0]

    # Time-major inside the kernel (tiny one-off transpose in XLA).
    x_tm = jnp.transpose(x, (1, 0, 2))            # (T, B, D_in)

    # Zero-pad regressor weights to 128 lanes for an unmasked output store.
    w_out = params["w_out"]                       # (H, 2)
    b_out = params["b_out"]                       # (1, 2)
    n_out = w_out.shape[1]
    w_out_pad = jnp.zeros((H, _OUT_PAD), jnp.float32).at[:, :n_out].set(w_out)
    b_out_pad = jnp.zeros((1, _OUT_PAD), jnp.float32).at[:, :n_out].set(b_out)

    flat = [x_tm]
    for (w_ih, w_hh, b) in params["rnn"]:
        flat += [w_ih, w_hh, b]
    flat += [w_out_pad, b_out_pad]

    # Single grid-less pallas_call: every operand is one full VMEM block
    # (weights loaded exactly once; no per-step DMA or grid-step overhead).
    y_pad = pl.pallas_call(
        _make_fused_kernel(n_layers, B, T, H, D_in),
        out_shape=jax.ShapeDtypeStruct((T * B, _OUT_PAD), jnp.float32),
        scratch_shapes=[pltpu.VMEM((T, B, H), jnp.float32)],
    )(*flat)

    # Un-pad lanes and return batch-first (B, T, 2).
    return jnp.transpose(y_pad[:, :n_out].reshape(T, B, n_out), (1, 0, 2))


# --------------------------- pure-JAX reference -------------------------------

def ref_forward(x, params):
    h = x
    for (w_ih, w_hh, b) in params["rnn"]:
        B, T, _ = h.shape
        H = w_hh.shape[0]

        def step(hprev, xt, w_ih=w_ih, w_hh=w_hh, b=b):
            hn = jnp.tanh(xt @ w_ih + hprev @ w_hh + b)
            return hn, hn

        _, hs = jax.lax.scan(step, jnp.zeros((B, H), jnp.float32),
                             jnp.transpose(h, (1, 0, 2)))
        h = jnp.transpose(hs, (1, 0, 2))
    return h @ params["w_out"] + params["b_out"]


# ---------------------------------- main --------------------------------------

def init_params(key, wifi_nums, mag_nums, rnn_layers, rnn_dims):
    D_in = wifi_nums + mag_nums
    params = {"rnn": []}
    for layer in range(rnn_layers):
        d = D_in if layer == 0 else rnn_dims
        k1, k2, k3, k4, key = jax.random.split(key, 5)
        scale = 1.0 / jnp.sqrt(rnn_dims)
        w_ih = jax.random.uniform(k1, (d, rnn_dims), jnp.float32, -scale, scale)
        w_hh = jax.random.uniform(k2, (rnn_dims, rnn_dims), jnp.float32, -scale, scale)
        b_ih = jax.random.uniform(k3, (rnn_dims,), jnp.float32, -scale, scale)
        b_hh = jax.random.uniform(k4, (rnn_dims,), jnp.float32, -scale, scale)
        params["rnn"].append((w_ih, w_hh, (b_ih + b_hh).reshape(1, rnn_dims)))
    k1, k2, key = jax.random.split(key, 3)
    scale = 1.0 / jnp.sqrt(rnn_dims)
    params["w_out"] = jax.random.uniform(k1, (rnn_dims, 2), jnp.float32, -scale, scale)
    params["b_out"] = jax.random.uniform(k2, (1, 2), jnp.float32, -scale, scale)
    return params


if __name__ == "__main__":
    wifi_nums, mag_nums = 12, 4
    rnn_layers, rnn_dims = 2, 32
    B, T = 2, 8

    key = jax.random.PRNGKey(0)
    kx, kp = jax.random.split(key)
    x = jax.random.normal(kx, (B, T, mag_nums + wifi_nums), jnp.float32)
    params = init_params(kp, wifi_nums, mag_nums, rnn_layers, rnn_dims)

    out = model_rnn_forward(x, params, mag_nums)
    out = jax.block_until_ready(out)

    ref = ref_forward(x, params)
    assert out.shape == (B, T, 2), out.shape
    assert jnp.allclose(out, ref, atol=1e-5, rtol=1e-5), (
        f"max abs err = {jnp.max(jnp.abs(out - ref))}")

    print("KERNEL_OK")
</pallas_src>

<mosaic_0001>
module attributes {stable_mosaic.version = 11 : i64} {
  func.func @kernel(%arg0: memref<8x2x16xf32, #tpu.memory_space<vmem>>, %arg1: memref<16x32xf32, #tpu.memory_space<vmem>>, %arg2: memref<32x32xf32, #tpu.memory_space<vmem>>, %arg3: memref<1x32xf32, #tpu.memory_space<vmem>>, %arg4: memref<32x32xf32, #tpu.memory_space<vmem>>, %arg5: memref<32x32xf32, #tpu.memory_space<vmem>>, %arg6: memref<1x32xf32, #tpu.memory_space<vmem>>, %arg7: memref<32x128xf32, #tpu.memory_space<vmem>>, %arg8: memref<1x128xf32, #tpu.memory_space<vmem>>, %arg9: memref<16x128xf32, #tpu.memory_space<vmem>>, %arg10: memref<8x2x32xf32, #tpu.memory_space<vmem>>) attributes {dimension_semantics = [], scalar_prefetch = 0 : i64, scratch_operands = 1 : i64, tpu.core_type = #tpu.core_type<tc>} {
    %c0 = arith.constant 0 : index
    %c0_0 = arith.constant 0 : index
    %c0_1 = arith.constant 0 : index
    %0 = vector.load %arg0[%c0, %c0_0, %c0_1] : memref<8x2x16xf32, #tpu.memory_space<vmem>>, vector<8x2x16xf32>
    %c0_2 = arith.constant 0 : index
    %c0_3 = arith.constant 0 : index
    %1 = vector.load %arg1[%c0_2, %c0_3] : memref<16x32xf32, #tpu.memory_space<vmem>>, vector<16x32xf32>
    %c0_4 = arith.constant 0 : index
    %c0_5 = arith.constant 0 : index
    %2 = vector.load %arg2[%c0_4, %c0_5] : memref<32x32xf32, #tpu.memory_space<vmem>>, vector<32x32xf32>
    %c0_6 = arith.constant 0 : index
    %c0_7 = arith.constant 0 : index
    %3 = vector.load %arg3[%c0_6, %c0_7] : memref<1x32xf32, #tpu.memory_space<vmem>>, vector<1x32xf32>
    %4 = vector.shape_cast %0 : vector<8x2x16xf32> to vector<16x16xf32>
    %cst = arith.constant dense<0.000000e+00> : vector<16x32xf32>
    %5 = tpu.matmul %4, %1, %cst {dimension_numbers = #tpu.dot_dimension_numbers<[1], [0], [0], [1], [0, 0, 1, 1], [], []>} : vector<16x16xf32>, vector<16x32xf32>, vector<16x32xf32> -> vector<16x32xf32>
    %6 = vector.broadcast %3 : vector<1x32xf32> to vector<16x32xf32>
    %7 = arith.addf %5, %6 : vector<16x32xf32>
    %8 = vector.shape_cast %7 : vector<16x32xf32> to vector<8x2x32xf32>
    %c0_8 = arith.constant 0 : index
    %c0_9 = arith.constant 0 : index
    %9 = vector.load %arg4[%c0_8, %c0_9] : memref<32x32xf32, #tpu.memory_space<vmem>>, vector<32x32xf32>
    %c0_10 = arith.constant 0 : index
    %c0_11 = arith.constant 0 : index
    %10 = vector.load %arg5[%c0_10, %c0_11] : memref<32x32xf32, #tpu.memory_space<vmem>>, vector<32x32xf32>
    %c0_12 = arith.constant 0 : index
    %c0_13 = arith.constant 0 : index
    %11 = vector.load %arg6[%c0_12, %c0_13] : memref<1x32xf32, #tpu.memory_space<vmem>>, vector<1x32xf32>
    %12 = vector.shape_cast %11 : vector<1x32xf32> to vector<1x32xf32>
    %13 = vector.broadcast %12 : vector<1x32xf32> to vector<2x32xf32>
    %cst_14 = arith.constant 0.000000e+00 : f32
    %14 = vector.broadcast %cst_14 : f32 to vector<2x32xf32>
    %cst_15 = arith.constant 0.000000e+00 : f32
    %15 = vector.broadcast %cst_15 : f32 to vector<2x32xf32>
    %16 = vector.extract_strided_slice %8 {offsets = [0, 0, 0], sizes = [1, 2, 32], strides = [1, 1, 1]} : vector<8x2x32xf32> to vector<1x2x32xf32>
    %17 = vector.shape_cast %16 : vector<1x2x32xf32> to vector<2x32xf32>
    %cst_16 = arith.constant dense<0.000000e+00> : vector<2x32xf32>
    %18 = tpu.matmul %14, %2, %cst_16 {dimension_numbers = #tpu.dot_dimension_numbers<[1], [0], [0], [1], [0, 0, 1, 1], [], []>} : vector<2x32xf32>, vector<32x32xf32>, vector<2x32xf32> -> vector<2x32xf32>
    %19 = arith.addf %17, %18 : vector<2x32xf32>
    %20 = math.tanh %19 : vector<2x32xf32>
    %cst_17 = arith.constant dense<0.000000e+00> : vector<2x32xf32>
    %21 = tpu.matmul %20, %9, %cst_17 {dimension_numbers = #tpu.dot_dimension_numbers<[1], [0], [0], [1], [0, 0, 1, 1], [], []>} : vector<2x32xf32>, vector<32x32xf32>, vector<2x32xf32> -> vector<2x32xf32>
    %22 = arith.addf %21, %13 : vector<2x32xf32>
    %cst_18 = arith.constant dense<0.000000e+00> : vector<2x32xf32>
    %23 = tpu.matmul %15, %10, %cst_18 {dimension_numbers = #tpu.dot_dimension_numbers<[1], [0], [0], [1], [0, 0, 1, 1], [], []>} : vector<2x32xf32>, vector<32x32xf32>, vector<2x32xf32> -> vector<2x32xf32>
    %24 = arith.addf %22, %23 : vector<2x32xf32>
    %25 = math.tanh %24 : vector<2x32xf32>
    %c0_19 = arith.constant 0 : index
    %c0_20 = arith.constant 0 : index
    %c0_21 = arith.constant 0 : index
    %26 = vector.load %arg10[%c0_19, %c0_20, %c0_21] : memref<8x2x32xf32, #tpu.memory_space<vmem>>, vector<1x2x32xf32>
    %27 = vector.shape_cast %26 : vector<1x2x32xf32> to vector<2x32xf32>
    %28 = vector.shape_cast %25 : vector<2x32xf32> to vector<1x2x32xf32>
    tpu.vector_store %arg10[%c0_19, %c0_20, %c0_21], %28 {strides = array<i32>} : memref<8x2x32xf32, #tpu.memory_space<vmem>>, vector<1x2x32xf32>,
    %29 = vector.extract_strided_slice %8 {offsets = [1, 0, 0], sizes = [1, 2, 32], strides = [1, 1, 1]} : vector<8x2x32xf32> to vector<1x2x32xf32>
    %30 = vector.shape_cast %29 : vector<1x2x32xf32> to vector<2x32xf32>
    %cst_22 = arith.constant dense<0.000000e+00> : vector<2x32xf32>
    %31 = tpu.matmul %20, %2, %cst_22 {dimension_numbers = #tpu.dot_dimension_numbers<[1], [0], [0], [1], [0, 0, 1, 1], [], []>} : vector<2x32xf32>, vector<32x32xf32>, vector<2x32xf32> -> vector<2x32xf32>
    %32 = arith.addf %30, %31 : vector<2x32xf32>
    %33 = math.tanh %32 : vector<2x32xf32>
    %cst_23 = arith.constant dense<0.000000e+00> : vector<2x32xf32>
    %34 = tpu.matmul %33, %9, %cst_23 {dimension_numbers = #tpu.dot_dimension_numbers<[1], [0], [0], [1], [0, 0, 1, 1], [], []>} : vector<2x32xf32>, vector<32x32xf32>, vector<2x32xf32> -> vector<2x32xf32>
    %35 = arith.addf %34, %13 : vector<2x32xf32>
    %cst_24 = arith.constant dense<0.000000e+00> : vector<2x32xf32>
    %36 = tpu.matmul %25, %10, %cst_24 {dimension_numbers = #tpu.dot_dimension_numbers<[1], [0], [0], [1], [0, 0, 1, 1], [], []>} : vector<2x32xf32>, vector<32x32xf32>, vector<2x32xf32> -> vector<2x32xf32>
    %37 = arith.addf %35, %36 : vector<2x32xf32>
    %38 = math.tanh %37 : vector<2x32xf32>
    %c1 = arith.constant 1 : index
    %c0_25 = arith.constant 0 : index
    %c0_26 = arith.constant 0 : index
    %39 = vector.load %arg10[%c1, %c0_25, %c0_26] : memref<8x2x32xf32, #tpu.memory_space<vmem>>, vector<1x2x32xf32>
    %40 = vector.shape_cast %39 : vector<1x2x32xf32> to vector<2x32xf32>
    %41 = vector.shape_cast %38 : vector<2x32xf32> to vector<1x2x32xf32>
    tpu.vector_store %arg10[%c1, %c0_25, %c0_26], %41 {strides = array<i32>} : memref<8x2x32xf32, #tpu.memory_space<vmem>>, vector<1x2x32xf32>,
    %42 = vector.extract_strided_slice %8 {offsets = [2, 0, 0], sizes = [1, 2, 32], strides = [1, 1, 1]} : vector<8x2x32xf32> to vector<1x2x32xf32>
    %43 = vector.shape_cast %42 : vector<1x2x32xf32> to vector<2x32xf32>
    %cst_27 = arith.constant dense<0.000000e+00> : vector<2x32xf32>
    %44 = tpu.matmul %33, %2, %cst_27 {dimension_numbers = #tpu.dot_dimension_numbers<[1], [0], [0], [1], [0, 0, 1, 1], [], []>} : vector<2x32xf32>, vector<32x32xf32>, vector<2x32xf32> -> vector<2x32xf32>
    %45 = arith.addf %43, %44 : vector<2x32xf32>
    %46 = math.tanh %45 : vector<2x32xf32>
    %cst_28 = arith.constant dense<0.000000e+00> : vector<2x32xf32>
    %47 = tpu.matmul %46, %9, %cst_28 {dimension_numbers = #tpu.dot_dimension_numbers<[1], [0], [0], [1], [0, 0, 1, 1], [], []>} : vector<2x32xf32>, vector<32x32xf32>, vector<2x32xf32> -> vector<2x32xf32>
    %48 = arith.addf %47, %13 : vector<2x32xf32>
    %cst_29 = arith.constant dense<0.000000e+00> : vector<2x32xf32>
    %49 = tpu.matmul %38, %10, %cst_29 {dimension_numbers = #tpu.dot_dimension_numbers<[1], [0], [0], [1], [0, 0, 1, 1], [], []>} : vector<2x32xf32>, vector<32x32xf32>, vector<2x32xf32> -> vector<2x32xf32>
    %50 = arith.addf %48, %49 : vector<2x32xf32>
    %51 = math.tanh %50 : vector<2x32xf32>
    %c2 = arith.constant 2 : index
    %c0_30 = arith.constant 0 : index
    %c0_31 = arith.constant 0 : index
    %52 = vector.load %arg10[%c2, %c0_30, %c0_31] : memref<8x2x32xf32, #tpu.memory_space<vmem>>, vector<1x2x32xf32>
    %53 = vector.shape_cast %52 : vector<1x2x32xf32> to vector<2x32xf32>
    %54 = vector.shape_cast %51 : vector<2x32xf32> to vector<1x2x32xf32>
    tpu.vector_store %arg10[%c2, %c0_30, %c0_31], %54 {strides = array<i32>} : memref<8x2x32xf32, #tpu.memory_space<vmem>>, vector<1x2x32xf32>,
    %55 = vector.extract_strided_slice %8 {offsets = [3, 0, 0], sizes = [1, 2, 32], strides = [1, 1, 1]} : vector<8x2x32xf32> to vector<1x2x32xf32>
    %56 = vector.shape_cast %55 : vector<1x2x32xf32> to vector<2x32xf32>
    %cst_32 = arith.constant dense<0.000000e+00> : vector<2x32xf32>
    %57 = tpu.matmul %46, %2, %cst_32 {dimension_numbers = #tpu.dot_dimension_numbers<[1], [0], [0], [1], [0, 0, 1, 1], [], []>} : vector<2x32xf32>, vector<32x32xf32>, vector<2x32xf32> -> vector<2x32xf32>
    %58 = arith.addf %56, %57 : vector<2x32xf32>
    %59 = math.tanh %58 : vector<2x32xf32>
    %cst_33 = arith.constant dense<0.000000e+00> : vector<2x32xf32>
    %60 = tpu.matmul %59, %9, %cst_33 {dimension_numbers = #tpu.dot_dimension_numbers<[1], [0], [0], [1], [0, 0, 1, 1], [], []>} : vector<2x32xf32>, vector<32x32xf32>, vector<2x32xf32> -> vector<2x32xf32>
    %61 = arith.addf %60, %13 : vector<2x32xf32>
    %cst_34 = arith.constant dense<0.000000e+00> : vector<2x32xf32>
    %62 = tpu.matmul %51, %10, %cst_34 {dimension_numbers = #tpu.dot_dimension_numbers<[1], [0], [0], [1], [0, 0, 1, 1], [], []>} : vector<2x32xf32>, vector<32x32xf32>, vector<2x32xf32> -> vector<2x32xf32>
    %63 = arith.addf %61, %62 : vector<2x32xf32>
    %64 = math.tanh %63 : vector<2x32xf32>
    %c3 = arith.constant 3 : index
    %c0_35 = arith.constant 0 : index
    %c0_36 = arith.constant 0 : index
    %65 = vector.load %arg10[%c3, %c0_35, %c0_36] : memref<8x2x32xf32, #tpu.memory_space<vmem>>, vector<1x2x32xf32>
    %66 = vector.shape_cast %65 : vector<1x2x32xf32> to vector<2x32xf32>
    %67 = vector.shape_cast %64 : vector<2x32xf32> to vector<1x2x32xf32>
    tpu.vector_store %arg10[%c3, %c0_35, %c0_36], %67 {strides = array<i32>} : memref<8x2x32xf32, #tpu.memory_space<vmem>>, vector<1x2x32xf32>,
    %68 = vector.extract_strided_slice %8 {offsets = [4, 0, 0], sizes = [1, 2, 32], strides = [1, 1, 1]} : vector<8x2x32xf32> to vector<1x2x32xf32>
    %69 = vector.shape_cast %68 : vector<1x2x32xf32> to vector<2x32xf32>
    %cst_37 = arith.constant dense<0.000000e+00> : vector<2x32xf32>
    %70 = tpu.matmul %59, %2, %cst_37 {dimension_numbers = #tpu.dot_dimension_numbers<[1], [0], [0], [1], [0, 0, 1, 1], [], []>} : vector<2x32xf32>, vector<32x32xf32>, vector<2x32xf32> -> vector<2x32xf32>
    %71 = arith.addf %69, %70 : vector<2x32xf32>
    %72 = math.tanh %71 : vector<2x32xf32>
    %cst_38 = arith.constant dense<0.000000e+00> : vector<2x32xf32>
    %73 = tpu.matmul %72, %9, %cst_38 {dimension_numbers = #tpu.dot_dimension_numbers<[1], [0], [0], [1], [0, 0, 1, 1], [], []>} : vector<2x32xf32>, vector<32x32xf32>, vector<2x32xf32> -> vector<2x32xf32>
    %74 = arith.addf %73, %13 : vector<2x32xf32>
    %cst_39 = arith.constant dense<0.000000e+00> : vector<2x32xf32>
    %75 = tpu.matmul %64, %10, %cst_39 {dimension_numbers = #tpu.dot_dimension_numbers<[1], [0], [0], [1], [0, 0, 1, 1], [], []>} : vector<2x32xf32>, vector<32x32xf32>, vector<2x32xf32> -> vector<2x32xf32>
    %76 = arith.addf %74, %75 : vector<2x32xf32>
    %77 = math.tanh %76 : vector<2x32xf32>
    %c4 = arith.constant 4 : index
    %c0_40 = arith.constant 0 : index
    %c0_41 = arith.constant 0 : index
    %78 = vector.load %arg10[%c4, %c0_40, %c0_41] : memref<8x2x32xf32, #tpu.memory_space<vmem>>, vector<1x2x32xf32>
    %79 = vector.shape_cast %78 : vector<1x2x32xf32> to vector<2x32xf32>
    %80 = vector.shape_cast %77 : vector<2x32xf32> to vector<1x2x32xf32>
    tpu.vector_store %arg10[%c4, %c0_40, %c0_41], %80 {strides = array<i32>} : memref<8x2x32xf32, #tpu.memory_space<vmem>>, vector<1x2x32xf32>,
    %81 = vector.extract_strided_slice %8 {offsets = [5, 0, 0], sizes = [1, 2, 32], strides = [1, 1, 1]} : vector<8x2x32xf32> to vector<1x2x32xf32>
    %82 = vector.shape_cast %81 : vector<1x2x32xf32> to vector<2x32xf32>
    %cst_42 = arith.constant dense<0.000000e+00> : vector<2x32xf32>
    %83 = tpu.matmul %72, %2, %cst_42 {dimension_numbers = #tpu.dot_dimension_numbers<[1], [0], [0], [1], [0, 0, 1, 1], [], []>} : vector<2x32xf32>, vector<32x32xf32>, vector<2x32xf32> -> vector<2x32xf32>
    %84 = arith.addf %82, %83 : vector<2x32xf32>
    %85 = math.tanh %84 : vector<2x32xf32>
    %cst_43 = arith.constant dense<0.000000e+00> : vector<2x32xf32>
    %86 = tpu.matmul %85, %9, %cst_43 {dimension_numbers = #tpu.dot_dimension_numbers<[1], [0], [0], [1], [0, 0, 1, 1], [], []>} : vector<2x32xf32>, vector<32x32xf32>, vector<2x32xf32> -> vector<2x32xf32>
    %87 = arith.addf %86, %13 : vector<2x32xf32>
    %cst_44 = arith.constant dense<0.000000e+00> : vector<2x32xf32>
    %88 = tpu.matmul %77, %10, %cst_44 {dimension_numbers = #tpu.dot_dimension_numbers<[1], [0], [0], [1], [0, 0, 1, 1], [], []>} : vector<2x32xf32>, vector<32x32xf32>, vector<2x32xf32> -> vector<2x32xf32>
    %89 = arith.addf %87, %88 : vector<2x32xf32>
    %90 = math.tanh %89 : vector<2x32xf32>
    %c5 = arith.constant 5 : index
    %c0_45 = arith.constant 0 : index
    %c0_46 = arith.constant 0 : index
    %91 = vector.load %arg10[%c5, %c0_45, %c0_46] : memref<8x2x32xf32, #tpu.memory_space<vmem>>, vector<1x2x32xf32>
    %92 = vector.shape_cast %91 : vector<1x2x32xf32> to vector<2x32xf32>
    %93 = vector.shape_cast %90 : vector<2x32xf32> to vector<1x2x32xf32>
    tpu.vector_store %arg10[%c5, %c0_45, %c0_46], %93 {strides = array<i32>} : memref<8x2x32xf32, #tpu.memory_space<vmem>>, vector<1x2x32xf32>,
    %94 = vector.extract_strided_slice %8 {offsets = [6, 0, 0], sizes = [1, 2, 32], strides = [1, 1, 1]} : vector<8x2x32xf32> to vector<1x2x32xf32>
    %95 = vector.shape_cast %94 : vector<1x2x32xf32> to vector<2x32xf32>
    %cst_47 = arith.constant dense<0.000000e+00> : vector<2x32xf32>
    %96 = tpu.matmul %85, %2, %cst_47 {dimension_numbers = #tpu.dot_dimension_numbers<[1], [0], [0], [1], [0, 0, 1, 1], [], []>} : vector<2x32xf32>, vector<32x32xf32>, vector<2x32xf32> -> vector<2x32xf32>
    %97 = arith.addf %95, %96 : vector<2x32xf32>
    %98 = math.tanh %97 : vector<2x32xf32>
    %cst_48 = arith.constant dense<0.000000e+00> : vector<2x32xf32>
    %99 = tpu.matmul %98, %9, %cst_48 {dimension_numbers = #tpu.dot_dimension_numbers<[1], [0], [0], [1], [0, 0, 1, 1], [], []>} : vector<2x32xf32>, vector<32x32xf32>, vector<2x32xf32> -> vector<2x32xf32>
    %100 = arith.addf %99, %13 : vector<2x32xf32>
    %cst_49 = arith.constant dense<0.000000e+00> : vector<2x32xf32>
    %101 = tpu.matmul %90, %10, %cst_49 {dimension_numbers = #tpu.dot_dimension_numbers<[1], [0], [0], [1], [0, 0, 1, 1], [], []>} : vector<2x32xf32>, vector<32x32xf32>, vector<2x32xf32> -> vector<2x32xf32>
    %102 = arith.addf %100, %101 : vector<2x32xf32>
    %103 = math.tanh %102 : vector<2x32xf32>
    %c6 = arith.constant 6 : index
    %c0_50 = arith.constant 0 : index
    %c0_51 = arith.constant 0 : index
    %104 = vector.load %arg10[%c6, %c0_50, %c0_51] : memref<8x2x32xf32, #tpu.memory_space<vmem>>, vector<1x2x32xf32>
    %105 = vector.shape_cast %104 : vector<1x2x32xf32> to vector<2x32xf32>
    %106 = vector.shape_cast %103 : vector<2x32xf32> to vector<1x2x32xf32>
    tpu.vector_store %arg10[%c6, %c0_50, %c0_51], %106 {strides = array<i32>} : memref<8x2x32xf32, #tpu.memory_space<vmem>>, vector<1x2x32xf32>,
    %107 = vector.extract_strided_slice %8 {offsets = [7, 0, 0], sizes = [1, 2, 32], strides = [1, 1, 1]} : vector<8x2x32xf32> to vector<1x2x32xf32>
    %108 = vector.shape_cast %107 : vector<1x2x32xf32> to vector<2x32xf32>
    %cst_52 = arith.constant dense<0.000000e+00> : vector<2x32xf32>
    %109 = tpu.matmul %98, %2, %cst_52 {dimension_numbers = #tpu.dot_dimension_numbers<[1], [0], [0], [1], [0, 0, 1, 1], [], []>} : vector<2x32xf32>, vector<32x32xf32>, vector<2x32xf32> -> vector<2x32xf32>
    %110 = arith.addf %108, %109 : vector<2x32xf32>
    %111 = math.tanh %110 : vector<2x32xf32>
    %cst_53 = arith.constant dense<0.000000e+00> : vector<2x32xf32>
    %112 = tpu.matmul %111, %9, %cst_53 {dimension_numbers = #tpu.dot_dimension_numbers<[1], [0], [0], [1], [0, 0, 1, 1], [], []>} : vector<2x32xf32>, vector<32x32xf32>, vector<2x32xf32> -> vector<2x32xf32>
    %113 = arith.addf %112, %13 : vector<2x32xf32>
    %cst_54 = arith.constant dense<0.000000e+00> : vector<2x32xf32>
    %114 = tpu.matmul %103, %10, %cst_54 {dimension_numbers = #tpu.dot_dimension_numbers<[1], [0], [0], [1], [0, 0, 1, 1], [], []>} : vector<2x32xf32>, vector<32x32xf32>, vector<2x32xf32> -> vector<2x32xf32>
    %115 = arith.addf %113, %114 : vector<2x32xf32>
    %116 = math.tanh %115 : vector<2x32xf32>
    %c7 = arith.constant 7 : index
    %c0_55 = arith.constant 0 : index
    %c0_56 = arith.constant 0 : index
    %117 = vector.load %arg10[%c7, %c0_55, %c0_56] : memref<8x2x32xf32, #tpu.memory_space<vmem>>, vector<1x2x32xf32>
    %118 = vector.shape_cast %117 : vector<1x2x32xf32> to vector<2x32xf32>
    %119 = vector.shape_cast %116 : vector<2x32xf32> to vector<1x2x32xf32>
    tpu.vector_store %arg10[%c7, %c0_55, %c0_56], %119 {strides = array<i32>} : memref<8x2x32xf32, #tpu.memory_space<vmem>>, vector<1x2x32xf32>,
    %c0_57 = arith.constant 0 : index
    %c0_58 = arith.constant 0 : index
    %c0_59 = arith.constant 0 : index
    %120 = vector.load %arg10[%c0_57, %c0_58, %c0_59] : memref<8x2x32xf32, #tpu.memory_space<vmem>>, vector<8x2x32xf32>
    %121 = vector.shape_cast %120 : vector<8x2x32xf32> to vector<16x32xf32>
    %c0_60 = arith.constant 0 : index
    %c0_61 = arith.constant 0 : index
    %122 = vector.load %arg7[%c0_60, %c0_61] : memref<32x128xf32, #tpu.memory_space<vmem>>, vector<32x128xf32>
    %cst_62 = arith.constant dense<0.000000e+00> : vector<16x128xf32>
    %123 = tpu.matmul %121, %122, %cst_62 {dimension_numbers = #tpu.dot_dimension_numbers<[1], [0], [0], [1], [0, 0, 1, 1], [], []>} : vector<16x32xf32>, vector<32x128xf32>, vector<16x128xf32> -> vector<16x128xf32>
    %c0_63 = arith.constant 0 : index
    %c0_64 = arith.constant 0 : index
    %124 = vector.load %arg8[%c0_63, %c0_64] : memref<1x128xf32, #tpu.memory_space<vmem>>, vector<1x128xf32>
    %125 = vector.broadcast %124 : vector<1x128xf32> to vector<16x128xf32>
    %126 = arith.addf %123, %125 : vector<16x128xf32>
    %c0_65 = arith.constant 0 : index
    %c0_66 = arith.constant 0 : index
    %127 = vector.load %arg9[%c0_65, %c0_66] : memref<16x128xf32, #tpu.memory_space<vmem>>, vector<16x128xf32>
    tpu.vector_store %arg9[%c0_65, %c0_66], %126 {strides = array<i32>} : memref<16x128xf32, #tpu.memory_space<vmem>>, vector<16x128xf32>,
    return
  }
}

</mosaic_0001>

<bundles_post_ra>
// kernel: tpu_custom_call.1
= control target key start
LH: loop header
LB: loop body
LE: loop exit
PB: predicated region body
PF: predicated region fallthrough
CT: control target
= control target key end

     0   :  { %14 = vsyncpa [#allocation4], 0  ;;  %s3488_s0 = inlined_call_operand.hbm [shape: f32[8,2,16], index: 0, kind: input, shape index: {}]   ;;  %s3489_s1 = inlined_call_operand.hbm [shape: f32[16,32], index: 1, kind: input, shape index: {}]   ;;  %s3490_s2 = inlined_call_operand.hbm [shape: f32[32,32], index: 2, kind: input, shape index: {}]   ;;  %s3491_s3 = inlined_call_operand.vmem [shape: f32[1,32], index: 3, kind: input, shape index: {}]   ;;  %s3492_s4 = inlined_call_operand.hbm [shape: f32[32,32], index: 4, kind: input, shape index: {}]   ;;  %s3493_s5 = inlined_call_operand.hbm [shape: f32[32,32], index: 5, kind: input, shape index: {}]   ;;  %s3494_s6 = inlined_call_operand.vmem [shape: f32[1,32], index: 6, kind: input, shape index: {}]   ;;  %s3495_s7 = inlined_call_operand.hbm [shape: f32[32,128], index: 7, kind: input, shape index: {}]   ;;  %s3496_s8 = inlined_call_operand.vmem [shape: f32[1,128], index: 8, kind: input, shape index: {}]   ;;  %s3497_s9 = inlined_call_operand.hbm [shape: f32[16,128], index: 9, kind: output, shape index: {}]  }
   0x1   :  { %15 = vsyncpa [#allocation7], 0 }
   0x2   :  { %16 = vsyncpa [#allocation10], 0 }
   0x3   :  { %17 = vsyncpa [#allocation13], 0 }
   0x4   :  { %18 = vsyncpa [#allocation5], 0  ;;  %s3088_s30 = smov [#allocation6]   ;;  %s2924_s13 = scalar_lea.hbm %s3489_s1, 256 }
   0x5   :  { %s36_s10 = sshll.u32 %s3088_s30, 4  ;;  %p2925_p0 = scmp.ne.s32.totalorder %s3489_s1, %s2924_s13  ;;  %s37_s10 = int_to_ptr.vmem [resolvable:$true] %s36_s10 }
   0x6   :  { %p2928_p1 = scmp.lt.u32.totalorder %s2924_s13, %s3489_s1 }
   0x8   :  { %p2930_p2 = pnand %p2928_p1, %p2925_p0 }
   0xa   :  { %2933 = shalt.err (!%p2930_p2)
}
   0xb   :  { %s2934_s18 = scalar_lea.vmem %s37_s10, 256  ;;  %p2939_p4 = scmp.lt.s32.totalorder %s37_s10, %s37_s10 }
   0xc   :  { %p2935_p3 = scmp.ne.s32.totalorder %s37_s10, %s2934_s18  ;;  %p2940_p5 = scmp.lt.s32.totalorder %s2934_s18, %s2934_s18 }
   0xe   :  { %p2941_p6 = por %p2940_p5, %p2939_p4 }
  0x10   :  { %p2942_p7 = pnand %p2941_p6, %p2935_p3 }
  0x12   :  { %2945 = shalt.err (!%p2942_p7)
}
  0x13   :  { %s3089_s19 = smov 128   ;;  %s3090_s20 = smov 8  }
  0x14   :  { %42 = dma.hbm_to_vmem [thread:$0]  %s3489_s1, 256, %s37_s10, [#allocation7], %s3089_s19, %s3089_s19, %s3090_s20  }
  0x15   :  { %s3091_s23 = smov [#allocation9]   ;;  %s3092_s25 = smov [#allocation3]  }
  0x16   :  { %s62_s24 = sshll.u32 %s3091_s23, 4  ;;  %s24_s26 = sshll.u32 %s3092_s25, 4  ;;  %s63_s24 = int_to_ptr.vmem [resolvable:$true] %s62_s24  ;;  %s25_s26 = int_to_ptr.vmem [resolvable:$true] %s24_s26 }
  0x17   :  { %s2946_s29 = scalar_lea.hbm %s3492_s4, 512 }
  0x18   :  { %p2947_p8 = scmp.ne.s32.totalorder %s3492_s4, %s2946_s29  ;;  %p2950_p9 = scmp.lt.u32.totalorder %s2946_s29, %s3492_s4 }
  0x1a   :  { %p2952_p10 = pnand %p2950_p9, %p2947_p8 }
  0x1c   :  { %2955 = shalt.err (!%p2952_p10)
}
  0x1d   :  { %s2956_s1 = scalar_lea.vmem %s63_s24, 512  ;;  %p2961_p12 = scmp.lt.s32.totalorder %s63_s24, %s63_s24 }
  0x1e   :  { %p2957_p11 = scmp.ne.s32.totalorder %s63_s24, %s2956_s1  ;;  %p2962_p13 = scmp.lt.s32.totalorder %s2956_s1, %s2956_s1 }
  0x20   :  { %p2963_p0 = por %p2962_p13, %p2961_p12 }
  0x22   :  { %p2964_p1 = pnand %p2963_p0, %p2957_p11 }
  0x24   :  { %2967 = shalt.err (!%p2964_p1)
}
  0x25   :  { %68 = dma.hbm_to_vmem [thread:$0]  %s3492_s4, 512, %s63_s24, [#allocation10], %s3089_s19, %s3089_s19, %s3090_s20  }
  0x26   :  { %s2968_s17 = scalar_lea.hbm %s3488_s0, 256 }
  0x27   :  { %p2969_p2 = scmp.ne.s32.totalorder %s3488_s0, %s2968_s17  ;;  %p2972_p3 = scmp.lt.u32.totalorder %s2968_s17, %s3488_s0 }
  0x29   :  { %p2974_p4 = pnand %p2972_p3, %p2969_p2 }
  0x2b   :  { %2977 = shalt.err (!%p2974_p4)
}
  0x2c   :  { %s2978_s25 = scalar_lea.vmem %s25_s26, 256  ;;  %p2983_p6 = scmp.lt.s32.totalorder %s25_s26, %s25_s26 }
  0x2d   :  { %p2979_p5 = scmp.ne.s32.totalorder %s25_s26, %s2978_s25  ;;  %p2984_p7 = scmp.lt.s32.totalorder %s2978_s25, %s2978_s25 }
  0x2f   :  { %p2985_p8 = por %p2984_p7, %p2983_p6 }
  0x31   :  { %p2986_p9 = pnand %p2985_p8, %p2979_p5 }
  0x33   :  { %2989 = shalt.err (!%p2986_p9)
}
  0x34   :  { %s3093_s4 = smov 32   ;;  %s3094_s24 = smov 2  }
  0x35   :  { %30 = dma.hbm_to_vmem [thread:$0]  %s3488_s0, 256, %s25_s26, [#allocation4], %s3093_s4, %s3093_s4, %s3094_s24  }
  0x36   :  { %s3095_s29 = smov [#allocation8]   ;;  %s3096_s11 = smov [#allocation11]  }
  0x37   :  { %s48_s30 = sshll.u32 %s3095_s29, 4  ;;  %s74_s12 = sshll.u32 %s3096_s11, 4  ;;  %s49_s30 = int_to_ptr.vmem [resolvable:$true] %s48_s30  ;;  %s75_s12 = int_to_ptr.vmem [resolvable:$true] %s74_s12 }
  0x38   :  { %s2990_s10 = scalar_lea.hbm %s3490_s2, 512 }
  0x39   :  { %p2991_p10 = scmp.ne.s32.totalorder %s3490_s2, %s2990_s10  ;;  %p2994_p11 = scmp.lt.u32.totalorder %s2990_s10, %s3490_s2 }
  0x3b   :  { %p2996_p12 = pnand %p2994_p11, %p2991_p10 }
  0x3d   :  { %2999 = shalt.err (!%p2996_p12)
}
  0x3e   :  { %s3000_s0 = scalar_lea.vmem %s49_s30, 512  ;;  %p3005_p0 = scmp.lt.s32.totalorder %s49_s30, %s49_s30 }
  0x3f   :  { %p3001_p13 = scmp.ne.s32.totalorder %s49_s30, %s3000_s0  ;;  %p3006_p1 = scmp.lt.s32.totalorder %s3000_s0, %s3000_s0 }
  0x41   :  { %p3007_p2 = por %p3006_p1, %p3005_p0 }
  0x43   :  { %p3008_p3 = pnand %p3007_p2, %p3001_p13 }
  0x45   :  { %3011 = shalt.err (!%p3008_p3)
}
  0x46   :  { %54 = dma.hbm_to_vmem [thread:$0]  %s3490_s2, 512, %s49_s30, [#allocation7], %s3089_s19, %s3089_s19, %s3090_s20  }
  0x47   :  { %s3012_s23 = scalar_lea.hbm %s3493_s5, 512 }
  0x48   :  { %p3013_p4 = scmp.ne.s32.totalorder %s3493_s5, %s3012_s23  ;;  %p3016_p5 = scmp.lt.u32.totalorder %s3012_s23, %s3493_s5 }
  0x4a   :  { %p3018_p6 = pnand %p3016_p5, %p3013_p4 }
  0x4c   :  { %3021 = shalt.err (!%p3018_p6)
}
  0x4d   :  { %s3022_s28 = scalar_lea.vmem %s75_s12, 512  ;;  %p3027_p8 = scmp.lt.s32.totalorder %s75_s12, %s75_s12 }
  0x4e   :  { %p3023_p7 = scmp.ne.s32.totalorder %s75_s12, %s3022_s28  ;;  %p3028_p9 = scmp.lt.s32.totalorder %s3022_s28, %s3022_s28 }
  0x50   :  { %p3029_p10 = por %p3028_p9, %p3027_p8 }
  0x52   :  { %p3030_p11 = pnand %p3029_p10, %p3023_p7 }
  0x54   :  { %3033 = shalt.err (!%p3030_p11)
}
  0x55   :  { %80 = dma.hbm_to_vmem [thread:$0]  %s3493_s5, 512, %s75_s12, [#allocation10], %s3089_s19, %s3089_s19, %s3090_s20  }
  0x56   :  { %s3097_s30 = smov [#allocation12]   ;;  %s3034_s10 = scalar_lea.hbm %s3495_s7, 512 }
  0x57   :  { %s88_s11 = sshll.u32 %s3097_s30, 4  ;;  %p3035_p12 = scmp.ne.s32.totalorder %s3495_s7, %s3034_s10  ;;  %s89_s11 = int_to_ptr.vmem [resolvable:$true] %s88_s11 }
  0x58   :  { %p3038_p13 = scmp.lt.u32.totalorder %s3034_s10, %s3495_s7 }
  0x5a   :  { %p3040_p0 = pnand %p3038_p13, %p3035_p12 }
  0x5c   :  { %3043 = shalt.err (!%p3040_p0)
}
  0x5d   :  { %s3044_s0 = scalar_lea.vmem %s89_s11, 512  ;;  %p3049_p2 = scmp.lt.s32.totalorder %s89_s11, %s89_s11 }
  0x5e   :  { %p3045_p1 = scmp.ne.s32.totalorder %s89_s11, %s3044_s0  ;;  %p3050_p3 = scmp.lt.s32.totalorder %s3044_s0, %s3044_s0 }
  0x60   :  { %p3051_p4 = por %p3050_p3, %p3049_p2 }
  0x62   :  { %p3052_p5 = pnand %p3051_p4, %p3045_p1 }
  0x64   :  { %3055 = shalt.err (!%p3052_p5)
}
  0x65   :  { %94 = dma.hbm_to_vmem [thread:$0]  %s3495_s7, 512, %s89_s11, [#allocation13], %s3089_s19, %s3089_s19, %s3090_s20  }
  0x66   :  { %3078 = dma.done.wait [#allocation4], 256  }
  0x67   :  { %3079 = vsyncadd [#allocation4], 4294967040 }
  0x68   :  { %3080 = dma.done.wait [#allocation7], 768  }
  0x69   :  { %3081 = vsyncadd [#allocation7], 4294966528 }
  0x6a   :  { %3082 = dma.done.wait [#allocation10], 1024  }
  0x6b   :  { %3083 = vsyncadd [#allocation10], 4294966272 }
  0x6c   :  { %3084 = dma.done.wait [#allocation13], 512  }
  0x6d   :  { %3085 = vsyncadd [#allocation13], 4294966784  ;;  %v149_v0 = vlaneseq  ;;  %v3098_v1 = vmov 0.0|0.0   ;;  %v3099_v2 = vmov 1983009808   ;;  %vm3100_vm0 = vmmov 0  }
  0x6e   :  { %2701 = vmatprep.subr.bf16.mxu1 %v3098_v1  ;;  %v147_v3 = vunpack.c.l.s4 %v3099_v2  ;;  %v3101_v4 = vmov 0.0   ;;  %v123_v7 = vld [vmem:[#allocation6] sm:$0xff]  ;;  %v124_v8 = vld [vmem:[#allocation6 + $0x8] sm:$0xff]  ;;  %v125_v9 = vld [vmem:[#allocation8] sm:$0xff]  ;;  %vm178_vm1 = vcmask 130048   ;;  %vm317_vm2 = vcmask 261120  }
  0x6f   :  { %2430 = vmatprep.mubr.msk.f32.mxu1 %vm3100_vm0, %v3101_v4  ;;  %v150_v6 = vshrl.u32 %v149_v0, 7  ;;  %v2697_v11 = vpack.c.bf16 %v124_v8, %v123_v7  ;;  %v126_v12 = vld [vmem:[#allocation8 + $0x8] sm:$0xff]  ;;  %v115_v13 = vld [vmem:[#allocation3] sm:$0x3]  ;;  %v116_v14 = vld [vmem:[#allocation3 + $0x2] sm:$0x3] }
  0x70   :  { %v148_v5 = vunpack.c.0.s8 %v147_v3  ;;  %v3245_v15 = vpack.c.bf16 %v126_v12, %v125_v9  ;;  %v117_v16 = vld [vmem:[#allocation3 + $0x4] sm:$0x3]  ;;  %v118_v17 = vld [vmem:[#allocation3 + $0x6] sm:$0x3]  ;;  %v144_v18 = vcombine.low %v115_v13, %v116_v14  ;;  %v119_v19 = vld [vmem:[#allocation3 + $0x8] sm:$0x3] }
  0x71   :  { %2698 = vmatprep.subr.bf16.mxu0 %v2697_v11  ;;  %v145_v20 = vcombine.low %v117_v16, %v118_v17  ;;  %v120_v21 = vld [vmem:[#allocation3 + $0xa] sm:$0x3]  ;;  %v121_v22 = vld [vmem:[#allocation3 + $0xc] sm:$0x3]  ;;  %v122_v23 = vld [vmem:[#allocation3 + $0xe] sm:$0x3] }
  0x72   :  { %v3243_v10 = vsub.s32 %v148_v5, %v150_v6  ;;  %2700 = vmatpush3.bf16.msra.mxu0 %v2697_v11  ;;  %2703 = vmatpush3.bf16.msra.mxu1 %v3245_v15  ;;  %v161_v25 = vcombine.low %v119_v19, %v120_v21  ;;  %v162_v26 = vcombine.low %v121_v22, %v122_v23  ;;  %v127_v27 = vld [vmem:[#allocation8 + $0x10] sm:$0xff]  ;;  %v128_v28 = vld [vmem:[#allocation8 + $0x18] sm:$0xff]  ;;  %v302_v35 = vld [vmem:[#allocation9] sm:$0xff]  ;;  %vm538_vm3 = vcmask 254976   ;;  %s3102_s22 = smov [#allocation14]  }
  0x73   :  { %2704 = vmatprep.subr.bf16.mxu1 %v3098_v1  ;;  %v3251_v30 = vpack.c.bf16 %v128_v28, %v127_v27  ;;  %2707 = vmatprep.subr.bf16.mxu0 %v3098_v1  ;;  %v303_v36 = vld [vmem:[#allocation9 + $0x8] sm:$0xff]  ;;  %v304_v37 = vld [vmem:[#allocation9 + $0x10] sm:$0xff]  ;;  %v305_v39 = vld [vmem:[#allocation9 + $0x18] sm:$0xff]  ;;  %s2241_s23 = sshll.u32 %s3102_s22, 4  ;;  %s2242_s23 = int_to_ptr.vmem [resolvable:$true] %s2241_s23 }
  0x74   :  { %v152_v24 = vrot.slane %v144_v18, %v3243_v10  ;;  %v159_v29 = vrot.slane %v145_v20, %v3243_v10  ;;  %v169_v31 = vrot.slane %v161_v25, %v3243_v10  ;;  %v176_v32 = vrot.slane %v162_v26, %v3243_v10  ;;  %v2256_v41 = vld [vmem:[%s3491_s3] ss:$0 sm:$0xff]  ;;  %v306_v50 = vld [vmem:[#allocation11] sm:$0xff]  ;;  %v307_v51 = vld [vmem:[#allocation11 + $0x8] sm:$0xff]  ;;  %s3056_s25 = scalar_lea.vmem %s2242_s23, 256  ;;  %p3061_p7 = scmp.lt.s32.totalorder %s2242_s23, %s2242_s23 }
  0x75   :  { %v3267_v38 = vpack.c.bf16 %v303_v36, %v302_v35  ;;  %v3270_v40 = vpack.c.bf16 %v305_v39, %v304_v37  ;;  %v3284_v52 = vpack.c.bf16 %v307_v51, %v306_v50  ;;  %v308_v53 = vld [vmem:[#allocation11 + $0x10] sm:$0xff]  ;;  %v309_v54 = vld [vmem:[#allocation11 + $0x18] sm:$0xff]  ;;  %p3057_p6 = scmp.ne.s32.totalorder %s2242_s23, %s3056_s25  ;;  %p3062_p8 = scmp.lt.s32.totalorder %s3056_s25, %s3056_s25 }
  0x76   :  { %v160_v33 = vcombine.low %v152_v24, %v159_v29  ;;  %v177_v34 = vcombine.low %v169_v31, %v176_v32  ;;  %2706 = vmatpush3.bf16.msra.mxu1 %v3251_v30  ;;  %v3289_v56 = vpack.c.bf16 %v309_v54, %v308_v53  ;;  %v3312_v61 = vld [vmem:[%s3494_s6] ss:$0 sm:$0xff] }
  0x77   :  { %2719 = vmatprep.subr.bf16.mxu1 %v3098_v1  ;;  %p3063_p9 = por %p3062_p8, %p3061_p7 }
  0x78   :  { %2419 = vmatprep.mubr.msk.f32.mxu0 %vm178_vm1, %v160_v33 }
  0x79   :  { %2420 = vmatmul.mubr.msk.f32.vlgmr.msra.gmra.mrb[0].mxu0 %vm178_vm1, %v177_v34  ;;  %2431 = vmatmul.mubr.f32.vlgmr.msra.gmra.mrb[0].mxu1 %v3101_v4  ;;  %p3064_p10 = pnand %p3063_p9, %p3057_p6 }
  0x7a   :  { %2441 = vmatprep.mubr.msk.f32.mxu0 %vm3100_vm0, %v3101_v4  ;;  %2721 = vmatpush3.bf16.msra.mxu1 %v3245_v15 }
  0x7b   :  { %2463 = vmatprep.mubr.msk.f32.mxu1 %vm3100_vm0, %v3101_v4  ;;  %2722 = vmatprep.subr.bf16.mxu1 %v3098_v1 }
  0x7c   :  { %2709 = vmatpush3.bf16.msra.mxu0 %v3267_v38 }
  0x7d   :  { %2710 = vmatprep.subr.bf16.mxu0 %v3098_v1 }
  0x7e   :  { %2724 = vmatpush3.bf16.msra.mxu1 %v3251_v30 }
  0x7f   :  { %2725 = vmatprep.subr.bf16.mxu1 %v3098_v1 }
  0x80   :  { %2712 = vmatpush3.bf16.msra.mxu0 %v3270_v40 }
  0x81   :  { %2713 = vmatprep.subr.bf16.mxu0 %v3098_v1 }
 0x14c   :  { %v2421_v42 = vpop.f32.mrb[0].mxu0  ;;  %v387_v45 = vpop.f32.mrb[0].mxu1 }
 0x14d   :  { %v3278_v43 = vadd.f32 %v2421_v42, %v2256_v41  ;;  %v249_v44 = vpop.f32.mrb[1].mxu0  ;;  %v2432_v47 = vpop.f32.mrb[1].mxu1 }
 0x14e   :  { %v3280_v46 = vadd.f32 %v2256_v41, %v249_v44 }
 0x14f   :  { %v284_v26 = vrot.slane %v3278_v43, %v3243_v10 }
 0x150   :  { %v267_v48 = vrot.slane %v3280_v46, %v3243_v10  ;;  %v260_v5 = vcombine.high %v3280_v46, %v3280_v46 }
 0x151   :  { %v292_v36 = vcombine.high %v284_v26, %v284_v26 }
 0x152   :  { %v391_v49 = vadd.f32 %v387_v45, %v267_v48  ;;  %v275_v57 = vcombine.high %v267_v48, %v267_v48  ;;  %v274_v6 = vrot.slane %v260_v5, %v3243_v10  ;;  %v277_v48 = vcombine.high %v3278_v43, %v3278_v43 }
 0x154   :  { %2892 = vtanh.f32 %v391_v49  ;;  %v276_v17 = vcombine.high %v274_v6, %v274_v6  ;;  %v291_v49 = vrot.slane %v277_v48, %v3243_v10 }
 0x15e   :  { %v2893_v55 = vpop.eup %2892 }
 0x15f   :  { %2442 = vmatmul.mubr.msk.f32.vlgmr.msra.gmra.mrb[2].mxu0 %vm317_vm2, %v2893_v55  ;;  %2464 = vmatmul.mubr.msk.f32.vlgmr.msra.gmra.mrb[2].mxu1 %vm317_vm2, %v2893_v55 }
 0x160   :  { %2715 = vmatpush3.bf16.msra.mxu0 %v3284_v52  ;;  %2452 = vmatprep.mubr.msk.f32.mxu0 %vm3100_vm0, %v3101_v4 }
 0x161   :  { %2716 = vmatprep.subr.bf16.mxu0 %v3098_v1  ;;  %2727 = vmatpush3.bf16.msra.mxu1 %v3267_v38 }
 0x162   :  { %2728 = vmatprep.subr.bf16.mxu1 %v3098_v1  ;;  %2474 = vmatprep.mubr.msk.f32.mxu1 %vm3100_vm0, %v3101_v4 }
 0x164   :  { %2718 = vmatpush3.bf16.msra.mxu0 %v3289_v56 }
 0x165   :  { %2737 = vmatprep.subr.bf16.mxu0 %v3098_v1  ;;  %2730 = vmatpush3.bf16.msra.mxu1 %v3270_v40 }
 0x166   :  { %2731 = vmatprep.subr.bf16.mxu1 %v3098_v1 }
 0x167   :  { %2453 = vmatmul.mubr.f32.vlgmr.msra.gmra.mrb[2].mxu0 %v3101_v4 }
 0x168   :  { %2739 = vmatpush3.bf16.msra.mxu0 %v3245_v15  ;;  %2496 = vmatprep.mubr.msk.f32.mxu0 %vm3100_vm0, %v3101_v4 }
 0x169   :  { %2740 = vmatprep.subr.bf16.mxu0 %v3098_v1 }
 0x16c   :  { %2742 = vmatpush3.bf16.msra.mxu0 %v3251_v30 }
 0x16d   :  { %2743 = vmatprep.subr.bf16.mxu0 %v3098_v1 }
 0x232   :  { %v606_v58 = vpop.f32.mrb[2].mxu1 }
 0x233   :  { %v610_v59 = vadd.f32 %v606_v58, %v275_v57  ;;  %v2465_v60 = vpop.f32.mrb[3].mxu1 }
 0x235   :  { %2894 = vtanh.f32 %v610_v59 }
 0x23a   :  { %v532_v62 = vpop.f32.mrb[2].mxu0 }
 0x23b   :  { %v2853_v63 = vadd.f32 %v3312_v61, %v532_v62  ;;  %v2454_v0 = vpop.f32.mrb[3].mxu0 }
 0x23d   :  { %2896 = vtanh.f32 %v2853_v63 }
 0x23f   :  { %v2895_v2 = vpop.eup %2894 }
 0x240   :  { %2475 = vmatmul.mubr.msk.f32.vlgmr.msra.gmra.mrb[4].mxu1 %vm317_vm2, %v2895_v2  ;;  %2497 = vmatmul.mubr.msk.f32.vlgmr.msra.gmra.mrb[4].mxu0 %vm317_vm2, %v2895_v2 }
 0x241   :  { %2733 = vmatpush3.bf16.msra.mxu1 %v3284_v52  ;;  %2485 = vmatprep.mubr.msk.f32.mxu1 %vm3100_vm0, %v3101_v4 }
 0x242   :  { %2734 = vmatprep.subr.bf16.mxu1 %v3098_v1  ;;  %2745 = vmatpush3.bf16.msra.mxu0 %v3267_v38 }
 0x243   :  { %2746 = vmatprep.subr.bf16.mxu0 %v3098_v1  ;;  %2507 = vmatprep.mubr.msk.f32.mxu0 %vm3100_vm0, %v3101_v4 }
 0x245   :  { %2736 = vmatpush3.bf16.msra.mxu1 %v3289_v56 }
 0x246   :  { %2755 = vmatprep.subr.bf16.mxu1 %v3098_v1  ;;  %2748 = vmatpush3.bf16.msra.mxu0 %v3270_v40 }
 0x247   :  { %v2897_v3 = vpop.eup %2896  ;;  %2749 = vmatprep.subr.bf16.mxu0 %v3098_v1 }
 0x248   :  { %539 = vst.msk [vmem:[#allocation2] sm:$0x3] %vm538_vm3, %v2897_v3  ;;  %2486 = vmatmul.mubr.msk.f32.vlgmr.msra.gmra.mrb[4].mxu1 %vm317_vm2, %v2897_v3 }
 0x249   :  { %2757 = vmatpush3.bf16.msra.mxu1 %v3245_v15  ;;  %2529 = vmatprep.mubr.msk.f32.mxu1 %vm3100_vm0, %v3101_v4 }
 0x24a   :  { %2758 = vmatprep.subr.bf16.mxu1 %v3098_v1 }
 0x24d   :  { %2760 = vmatpush3.bf16.msra.mxu1 %v3251_v30 }
 0x24e   :  { %2761 = vmatprep.subr.bf16.mxu1 %v3098_v1 }
 0x24f   :  { %v2094_v43 = vld [vmem:[#allocation2] sm:$0x3] }
 0x313   :  { %v828_v7 = vpop.f32.mrb[4].mxu0 }
 0x314   :  { %v832_v8 = vadd.f32 %v828_v7, %v274_v6  ;;  %v2498_v9 = vpop.f32.mrb[5].mxu0 }
 0x316   :  { %2898 = vtanh.f32 %v832_v8 }
 0x31b   :  { %v754_v11 = vpop.f32.mrb[4].mxu1 }
 0x31c   :  { %v2854_v12 = vadd.f32 %v3312_v61, %v754_v11  ;;  %v2487_v13 = vpop.f32.mrb[5].mxu1 }
 0x31d   :  { %v2102_v13 = vld [vmem:[#allocation12] sm:$0xff] }
 0x31e   :  { %2900 = vtanh.f32 %v2854_v12 }
 0x320   :  { %v2899_v14 = vpop.eup %2898 }
 0x321   :  { %2508 = vmatmul.mubr.msk.f32.vlgmr.msra.gmra.mrb[6].mxu0 %vm317_vm2, %v2899_v14  ;;  %2530 = vmatmul.mubr.msk.f32.vlgmr.msra.gmra.mrb[6].mxu1 %vm317_vm2, %v2899_v14  ;;  %v2103_v14 = vld [vmem:[#allocation12 + $0x8] sm:$0xff] }
 0x322   :  { %2751 = vmatpush3.bf16.msra.mxu0 %v3284_v52  ;;  %2518 = vmatprep.mubr.msk.f32.mxu0 %vm3100_vm0, %v3101_v4 }
 0x323   :  { %2752 = vmatprep.subr.bf16.mxu0 %v3098_v1  ;;  %2763 = vmatpush3.bf16.msra.mxu1 %v3267_v38 }
 0x324   :  { %2764 = vmatprep.subr.bf16.mxu1 %v3098_v1  ;;  %2540 = vmatprep.mubr.msk.f32.mxu1 %vm3100_vm0, %v3101_v4 }
 0x326   :  { %2754 = vmatpush3.bf16.msra.mxu0 %v3289_v56 }
 0x327   :  { %2773 = vmatprep.subr.bf16.mxu0 %v3098_v1  ;;  %2766 = vmatpush3.bf16.msra.mxu1 %v3270_v40 }
 0x328   :  { %v2901_v16 = vpop.eup %2900  ;;  %2767 = vmatprep.subr.bf16.mxu1 %v3098_v1 }
 0x329   :  { %761 = vst.msk [vmem:[#allocation2 + $0x2] sm:$0x3] %vm538_vm3, %v2901_v16  ;;  %2519 = vmatmul.mubr.msk.f32.vlgmr.msra.gmra.mrb[6].mxu0 %vm317_vm2, %v2901_v16  ;;  %v2104_v16 = vld [vmem:[#allocation12 + $0x10] sm:$0xff] }
 0x32a   :  { %2775 = vmatpush3.bf16.msra.mxu0 %v3245_v15  ;;  %2562 = vmatprep.mubr.msk.f32.mxu0 %vm3100_vm0, %v3101_v4 }
 0x32b   :  { %2776 = vmatprep.subr.bf16.mxu0 %v3098_v1 }
 0x32e   :  { %2778 = vmatpush3.bf16.msra.mxu0 %v3251_v30 }
 0x32f   :  { %2779 = vmatprep.subr.bf16.mxu0 %v3098_v1 }
 0x330   :  { %v2095_v58 = vld [vmem:[#allocation2 + $0x2] sm:$0x3] }
 0x331   :  { %v2121_v62 = vcombine.low %v2094_v43, %v2095_v58 }
 0x333   :  { %v2129_v0 = vrot.slane %v2121_v62, %v3243_v10 }
 0x3f4   :  { %v1050_v18 = vpop.f32.mrb[6].mxu1 }
 0x3f5   :  { %v1054_v19 = vadd.f32 %v1050_v18, %v276_v17  ;;  %v2531_v20 = vpop.f32.mrb[7].mxu1  ;;  %v2845_v17 = vpack.c.bf16 %v2103_v14, %v2102_v13  ;;  %v2105_v18 = vld [vmem:[#allocation12 + $0x18] sm:$0xff] }
 0x3f7   :  { %2902 = vtanh.f32 %v1054_v19  ;;  %v2849_v19 = vpack.c.bf16 %v2105_v18, %v2104_v16 }
 0x3fc   :  { %v976_v21 = vpop.f32.mrb[6].mxu0 }
 0x3fd   :  { %v2855_v22 = vadd.f32 %v3312_v61, %v976_v21  ;;  %v2520_v23 = vpop.f32.mrb[7].mxu0 }
 0x3ff   :  { %2904 = vtanh.f32 %v2855_v22 }
 0x401   :  { %v2903_v24 = vpop.eup %2902 }
 0x402   :  { %2541 = vmatmul.mubr.msk.f32.vlgmr.msra.gmra.mrb[8].mxu1 %vm317_vm2, %v2903_v24  ;;  %2563 = vmatmul.mubr.msk.f32.vlgmr.msra.gmra.mrb[8].mxu0 %vm317_vm2, %v2903_v24 }
 0x403   :  { %2769 = vmatpush3.bf16.msra.mxu1 %v3284_v52  ;;  %2551 = vmatprep.mubr.msk.f32.mxu1 %vm3100_vm0, %v3101_v4 }
 0x404   :  { %2770 = vmatprep.subr.bf16.mxu1 %v3098_v1  ;;  %2781 = vmatpush3.bf16.msra.mxu0 %v3267_v38 }
 0x405   :  { %2782 = vmatprep.subr.bf16.mxu0 %v3098_v1  ;;  %2573 = vmatprep.mubr.msk.f32.mxu0 %vm3100_vm0, %v3101_v4 }
 0x407   :  { %2772 = vmatpush3.bf16.msra.mxu1 %v3289_v56 }
 0x408   :  { %2791 = vmatprep.subr.bf16.mxu1 %v3098_v1  ;;  %2784 = vmatpush3.bf16.msra.mxu0 %v3270_v40 }
 0x409   :  { %v2905_v25 = vpop.eup %2904  ;;  %2785 = vmatprep.subr.bf16.mxu0 %v3098_v1 }
 0x40a   :  { %983 = vst.msk [vmem:[#allocation2 + $0x4] sm:$0x3] %vm538_vm3, %v2905_v25  ;;  %2552 = vmatmul.mubr.msk.f32.vlgmr.msra.gmra.mrb[8].mxu1 %vm317_vm2, %v2905_v25 }
 0x40b   :  { %2793 = vmatpush3.bf16.msra.mxu1 %v3245_v15  ;;  %2595 = vmatprep.mubr.msk.f32.mxu1 %vm3100_vm0, %v3101_v4 }
 0x40c   :  { %2794 = vmatprep.subr.bf16.mxu1 %v3098_v1 }
 0x40f   :  { %2796 = vmatpush3.bf16.msra.mxu1 %v3251_v30 }
 0x410   :  { %2797 = vmatprep.subr.bf16.mxu1 %v3098_v1 }
 0x411   :  { %v2096_v59 = vld [vmem:[#allocation2 + $0x4] sm:$0x3] }
 0x4d5   :  { %v1272_v27 = vpop.f32.mrb[8].mxu0 }
 0x4d6   :  { %v1276_v28 = vadd.f32 %v1272_v27, %v284_v26  ;;  %v2564_v29 = vpop.f32.mrb[9].mxu0 }
 0x4d8   :  { %2906 = vtanh.f32 %v1276_v28 }
 0x4dd   :  { %v1198_v31 = vpop.f32.mrb[8].mxu1 }
 0x4de   :  { %v2856_v32 = vadd.f32 %v3312_v61, %v1198_v31  ;;  %v2553_v33 = vpop.f32.mrb[9].mxu1 }
 0x4e0   :  { %2908 = vtanh.f32 %v2856_v32 }
 0x4e2   :  { %v2907_v34 = vpop.eup %2906 }
 0x4e3   :  { %2574 = vmatmul.mubr.msk.f32.vlgmr.msra.gmra.mrb[10].mxu0 %vm317_vm2, %v2907_v34  ;;  %2596 = vmatmul.mubr.msk.f32.vlgmr.msra.gmra.mrb[10].mxu1 %vm317_vm2, %v2907_v34 }
 0x4e4   :  { %2787 = vmatpush3.bf16.msra.mxu0 %v3284_v52  ;;  %2584 = vmatprep.mubr.msk.f32.mxu0 %vm3100_vm0, %v3101_v4 }
 0x4e5   :  { %2788 = vmatprep.subr.bf16.mxu0 %v3098_v1  ;;  %2799 = vmatpush3.bf16.msra.mxu1 %v3267_v38 }
 0x4e6   :  { %2800 = vmatprep.subr.bf16.mxu1 %v3098_v1  ;;  %2606 = vmatprep.mubr.msk.f32.mxu1 %vm3100_vm0, %v3101_v4 }
 0x4e8   :  { %2790 = vmatpush3.bf16.msra.mxu0 %v3289_v56 }
 0x4e9   :  { %2809 = vmatprep.subr.bf16.mxu0 %v3098_v1  ;;  %2802 = vmatpush3.bf16.msra.mxu1 %v3270_v40 }
 0x4ea   :  { %v2909_v35 = vpop.eup %2908  ;;  %2803 = vmatprep.subr.bf16.mxu1 %v3098_v1 }
 0x4eb   :  { %1205 = vst.msk [vmem:[#allocation2 + $0x6] sm:$0x3] %vm538_vm3, %v2909_v35  ;;  %2585 = vmatmul.mubr.msk.f32.vlgmr.msra.gmra.mrb[10].mxu0 %vm317_vm2, %v2909_v35 }
 0x4ec   :  { %2811 = vmatpush3.bf16.msra.mxu0 %v3245_v15  ;;  %2628 = vmatprep.mubr.msk.f32.mxu0 %vm3100_vm0, %v3101_v4 }
 0x4ed   :  { %2812 = vmatprep.subr.bf16.mxu0 %v3098_v1 }
 0x4f0   :  { %2814 = vmatpush3.bf16.msra.mxu0 %v3251_v30 }
 0x4f1   :  { %2815 = vmatprep.subr.bf16.mxu0 %v3098_v1 }
 0x4f2   :  { %v2097_v57 = vld [vmem:[#allocation2 + $0x6] sm:$0x3] }
 0x4f3   :  { %v2122_v60 = vcombine.low %v2096_v59, %v2097_v57 }
 0x4f5   :  { %v2136_v63 = vrot.slane %v2122_v60, %v3243_v10 }
 0x4f7   :  { %v2137_v3 = vcombine.low %v2129_v0, %v2136_v63 }
 0x5b6   :  { %v1494_v37 = vpop.f32.mrb[10].mxu1 }
 0x5b7   :  { %v1498_v39 = vadd.f32 %v1494_v37, %v292_v36  ;;  %v2597_v41 = vpop.f32.mrb[11].mxu1 }
 0x5b9   :  { %2910 = vtanh.f32 %v1498_v39 }
 0x5be   :  { %v1420_v42 = vpop.f32.mrb[10].mxu0 }
 0x5bf   :  { %v2857_v44 = vadd.f32 %v3312_v61, %v1420_v42  ;;  %v2586_v45 = vpop.f32.mrb[11].mxu0 }
 0x5c1   :  { %2912 = vtanh.f32 %v2857_v44 }
 0x5c3   :  { %v2911_v46 = vpop.eup %2910 }
 0x5c4   :  { %2607 = vmatmul.mubr.msk.f32.vlgmr.msra.gmra.mrb[12].mxu1 %vm317_vm2, %v2911_v46  ;;  %2629 = vmatmul.mubr.msk.f32.vlgmr.msra.gmra.mrb[12].mxu0 %vm317_vm2, %v2911_v46 }
 0x5c5   :  { %2805 = vmatpush3.bf16.msra.mxu1 %v3284_v52  ;;  %2617 = vmatprep.mubr.msk.f32.mxu1 %vm3100_vm0, %v3101_v4 }
 0x5c6   :  { %2806 = vmatprep.subr.bf16.mxu1 %v3098_v1  ;;  %2817 = vmatpush3.bf16.msra.mxu0 %v3267_v38 }
 0x5c7   :  { %2818 = vmatprep.subr.bf16.mxu0 %v3098_v1  ;;  %2639 = vmatprep.mubr.msk.f32.mxu0 %vm3100_vm0, %v3101_v4 }
 0x5c9   :  { %2808 = vmatpush3.bf16.msra.mxu1 %v3289_v56 }
 0x5ca   :  { %2827 = vmatprep.subr.bf16.mxu1 %v3098_v1  ;;  %2820 = vmatpush3.bf16.msra.mxu0 %v3270_v40 }
 0x5cb   :  { %v2913_v47 = vpop.eup %2912  ;;  %2821 = vmatprep.subr.bf16.mxu0 %v3098_v1 }
 0x5cc   :  { %1427 = vst.msk [vmem:[#allocation2 + $0x8] sm:$0x3] %vm538_vm3, %v2913_v47  ;;  %2618 = vmatmul.mubr.msk.f32.vlgmr.msra.gmra.mrb[12].mxu1 %vm317_vm2, %v2913_v47 }
 0x5cd   :  { %2829 = vmatpush3.bf16.msra.mxu1 %v3245_v15  ;;  %2661 = vmatprep.mubr.msk.f32.mxu1 %vm3100_vm0, %v3101_v4 }
 0x5ce   :  { %2830 = vmatprep.subr.bf16.mxu1 %v3098_v1 }
 0x5d1   :  { %2832 = vmatpush3.bf16.msra.mxu1 %v3251_v30 }
 0x5d2   :  { %2833 = vmatprep.subr.bf16.mxu1 %v3098_v1 }
 0x5d3   :  { %v2098_v21 = vld [vmem:[#allocation2 + $0x8] sm:$0x3] }
 0x697   :  { %v1716_v50 = vpop.f32.mrb[12].mxu0 }
 0x698   :  { %v1720_v51 = vadd.f32 %v1716_v50, %v291_v49  ;;  %v2630_v53 = vpop.f32.mrb[13].mxu0 }
 0x69a   :  { %2914 = vtanh.f32 %v1720_v51 }
 0x69f   :  { %v1642_v54 = vpop.f32.mrb[12].mxu1 }
 0x6a0   :  { %v2858_v15 = vadd.f32 %v3312_v61, %v1642_v54  ;;  %v2619_v55 = vpop.f32.mrb[13].mxu1 }
 0x6a2   :  { %2916 = vtanh.f32 %v2858_v15 }
 0x6a4   :  { %v2915_v30 = vpop.eup %2914 }
 0x6a5   :  { %2640 = vmatmul.mubr.msk.f32.vlgmr.msra.gmra.mrb[14].mxu0 %vm317_vm2, %v2915_v30  ;;  %2662 = vmatmul.mubr.msk.f32.vlgmr.msra.gmra.mrb[14].mxu1 %vm317_vm2, %v2915_v30 }
 0x6a6   :  { %2823 = vmatpush3.bf16.msra.mxu0 %v3284_v52  ;;  %2650 = vmatprep.mubr.msk.f32.mxu0 %vm3100_vm0, %v3101_v4 }
 0x6a7   :  { %2824 = vmatprep.subr.bf16.mxu0 %v3098_v1  ;;  %2835 = vmatpush3.bf16.msra.mxu1 %v3267_v38  ;;  %v293_v38 = vcombine.high %v291_v49, %v291_v49 }
 0x6a8   :  { %2836 = vmatprep.subr.bf16.mxu1 %v3098_v1  ;;  %2672 = vmatprep.mubr.msk.f32.mxu1 %vm3100_vm0, %v3101_v4 }
 0x6aa   :  { %2826 = vmatpush3.bf16.msra.mxu0 %v3289_v56 }
 0x6ab   :  { %2838 = vmatpush3.bf16.msra.mxu1 %v3270_v40  ;;  %2846 = vmatprep.subr.bf16.mxu0 %v2845_v17 }
 0x6ac   :  { %v2917_v2 = vpop.eup %2916  ;;  %2839 = vmatprep.subr.bf16.mxu1 %v3098_v1 }
 0x6ad   :  { %1649 = vst.msk [vmem:[#allocation2 + $0xa] sm:$0x3] %vm538_vm3, %v2917_v2  ;;  %2651 = vmatmul.mubr.msk.f32.vlgmr.msra.gmra.mrb[14].mxu0 %vm317_vm2, %v2917_v2 }
 0x6ae   :  { %2694 = vmatprep.mubr.msk.f32.mxu0 %vm317_vm2, %v2137_v3  ;;  %2848 = vmatpush3.bf16.msra.mxu0 %v2845_v17 }
 0x6af   :  { %2850 = vmatprep.subr.bf16.mxu0 %v2849_v19 }
 0x6b2   :  { %2852 = vmatpush3.bf16.msra.mxu0 %v2849_v19 }
 0x6b4   :  { %v2099_v20 = vld [vmem:[#allocation2 + $0xa] sm:$0x3] }
 0x6b5   :  { %v2138_v22 = vcombine.low %v2098_v21, %v2099_v20 }
 0x6b7   :  { %v2146_v26 = vrot.slane %v2138_v22, %v3243_v10 }
 0x778   :  { %v1938_v5 = vpop.f32.mrb[14].mxu1 }
 0x779   :  { %v1942_v6 = vadd.f32 %v1938_v5, %v293_v38  ;;  %v2663_v7 = vpop.f32.mrb[15].mxu1 }
 0x77b   :  { %2918 = vtanh.f32 %v1942_v6 }
 0x780   :  { %v1864_v8 = vpop.f32.mrb[14].mxu0 }
 0x781   :  { %v2859_v9 = vadd.f32 %v3312_v61, %v1864_v8  ;;  %v2652_v11 = vpop.f32.mrb[15].mxu0 }
 0x783   :  { %2920 = vtanh.f32 %v2859_v9 }
 0x785   :  { %v2919_v40 = vpop.eup %2918 }
 0x786   :  { %2673 = vmatmul.mubr.msk.f32.vlgmr.msra.gmra.mrb[16].mxu1 %vm317_vm2, %v2919_v40 }
 0x787   :  { %2841 = vmatpush3.bf16.msra.mxu1 %v3284_v52  ;;  %2683 = vmatprep.mubr.msk.f32.mxu1 %vm3100_vm0, %v3101_v4 }
 0x788   :  { %2842 = vmatprep.subr.bf16.mxu1 %v3098_v1 }
 0x78b   :  { %2844 = vmatpush3.bf16.msra.mxu1 %v3289_v56 }
 0x78d   :  { %v2921_v12 = vpop.eup %2920 }
 0x78e   :  { %1871 = vst.msk [vmem:[#allocation2 + $0xc] sm:$0x3] %vm538_vm3, %v2921_v12  ;;  %2684 = vmatmul.mubr.msk.f32.vlgmr.msra.gmra.mrb[16].mxu1 %vm317_vm2, %v2921_v12 }
 0x795   :  { %v2100_v23 = vld [vmem:[#allocation2 + $0xc] sm:$0x3] }
 0x861   :  { %v2086_v4 = vpop.f32.mrb[16].mxu1 }
 0x862   :  { %v2860_v1 = vadd.f32 %v3312_v61, %v2086_v4  ;;  %v2685_v52 = vpop.f32.mrb[17].mxu1  ;;  %v2282_v61 = vld [vmem:[%s3496_s8] ss:$0 sm:$0xff] }
 0x864   :  { %2922 = vtanh.f32 %v2860_v1 }
 0x86e   :  { %v2923_v56 = vpop.eup %2922 }
 0x86f   :  { %2093 = vst.msk [vmem:[#allocation2 + $0xe] sm:$0x3] %vm538_vm3, %v2923_v56 }
 0x876   :  { %v2101_v24 = vld [vmem:[#allocation2 + $0xe] sm:$0x3] }
 0x877   :  { %v2139_v25 = vcombine.low %v2100_v23, %v2101_v24 }
 0x879   :  { %v2153_v27 = vrot.slane %v2139_v25, %v3243_v10 }
 0x87b   :  { %v2154_v28 = vcombine.low %v2146_v26, %v2153_v27 }
 0x87d   :  { %2695 = vmatmul.mubr.msk.f32.vlgmr.msra.gmra.mrb[16].mxu0 %vm317_vm2, %v2154_v28 }
 0x950   :  { %v2696_v29 = vpop.f32.mrb[16].mxu0 }
 0x951   :  { %v2231_v31 = vadd.f32 %v2696_v29, %v2282_v61  ;;  %v2225_v32 = vpop.f32.mrb[17].mxu0 }
 0x952   :  { %v2226_v33 = vadd.f32 %v2282_v61, %v2225_v32 }
 0x953   :  { %2235 = vst [vmem:[#allocation14 + $0x8] sm:$0xff] %v2231_v31 }
 0x954   :  { %2234 = vst [vmem:[#allocation14] sm:$0xff] %v2226_v33 }
 0x955   :  { %3067 = shalt.err (!%p3064_p10)
}
 0x956   :  { %s3068_s8 = scalar_lea.hbm %s3497_s9, 256 }
 0x957   :  { %p3069_p11 = scmp.ne.s32.totalorder %s3497_s9, %s3068_s8  ;;  %p3072_p12 = scmp.lt.u32.totalorder %s3068_s8, %s3497_s9 }
 0x959   :  { %p3074_p13 = pnand %p3072_p12, %p3069_p11 }
 0x95b   :  { %3077 = shalt.err (!%p3074_p13)
}
 0x95c   :  { %2247 = dma.vmem_to_hbm [thread:$0]  %s2242_s23, 256, %s3497_s9, [#allocation5], %s3089_s19, %s3089_s19, %s3090_s20  }
 0x95d   :  { %3086 = dma.done.wait [#allocation5], 256  }
 0x95e   :  { %3087 = vsyncadd [#allocation5], 4294967040 }
 0x95f   :  { %2251 = vsyncpa [#allocation4], 1 }
 0x960   :  { %2252 = vsyncpa [#allocation7], 1 }
 0x961   :  { %2253 = vsyncpa [#allocation10], 1 }
 0x962   :  { %2254 = vsyncpa [#allocation13], 1 }
 0x963   :  { %2255 = vsyncpa [#allocation5], 1 }

</bundles_post_ra>
